<compile_context>
chip_gen: v7x
topology: tpu7x:2x2x1
jax: 0.10.0
libtpu: 0.0.40
codegen_flags: <defaults>
</compile_context>

<pallas_src>
import jax
import jax.numpy as jnp
from jax.experimental import pallas as pl
from jax.experimental.pallas import tpu as pltpu


# --------------------------------------------------------------------------- #
# Kernel: one batch tile, fused block-diagonal 3-layer MLP                    #
# --------------------------------------------------------------------------- #
def _net_fused_kernel(x_ref, w1_ref, w2_ref, w3_ref, b_ref, o_ref):
    # Static layer widths (from the weight refs).
    n1 = w1_ref.shape[1]      # 2 * hidden
    n2 = w2_ref.shape[1]      # 2 * hidden
    n3 = w3_ref.shape[1]      # label

    cdt = w1_ref.dtype        # compute dtype (bf16 or f32); accumulation is f32

    # Hoist the packed bias rows once (f32, added to f32 accumulators).
    b1 = b_ref[0:1, :n1]
    b2 = b_ref[1:2, :n2]
    b3 = b_ref[2:3, :n3]

    # In-kernel cast of the LHS (free: VPU slot has slack; avoids a wrapper pass).
    x = x_ref[...].astype(cdt)                                  # (TB, F)

    # Layer 1 of both streams, fused block-diagonal:  h = relu(x @ W1 + b1)
    h = jnp.dot(x, w1_ref[...], preferred_element_type=jnp.float32)
    h = jnp.maximum(h + b1, 0.0)

    # Layer 2 of both streams:  h = relu(h @ W2 + b2)
    h = jnp.dot(h.astype(cdt), w2_ref[...], preferred_element_type=jnp.float32)
    h = jnp.maximum(h + b2, 0.0)

    # Layer 3 + fusion head pre-multiplied:  out = h @ (W3 @ Wcat) + b3f
    out = jnp.dot(h.astype(cdt), w3_ref[...], preferred_element_type=jnp.float32)
    out = out + b3

    o_ref[...] = out.astype(o_ref.dtype)


# --------------------------------------------------------------------------- #
# Wrapper                                                                     #
# --------------------------------------------------------------------------- #
def fuse_params(p):
    """Build block-diagonal fused weights, fold Wcat into layer 3, pack biases."""
    def blockdiag(a, b):
        za = jnp.zeros((a.shape[0], b.shape[1]), a.dtype)
        zb = jnp.zeros((b.shape[0], a.shape[1]), b.dtype)
        return jnp.block([[a, za], [zb, b]])

    w1 = blockdiag(p["w11"], p["w21"])                    # (F, 2H)
    w2 = blockdiag(p["w12"], p["w22"])                    # (2H, 2H)
    w3_full = blockdiag(p["w13"], p["w23"])               # (2H, 2L)

    # Fold the fusion head into layer 3 (no ReLU in between -> exact algebra).
    w3 = w3_full @ p["wcat"]                              # (2H, L)
    b3 = jnp.concatenate([p["b13"], p["b23"]], axis=1) @ p["wcat"] + p["bcat"]  # (1, L)

    b1 = jnp.concatenate([p["b11"], p["b21"]], axis=1)    # (1, 2H)
    b2 = jnp.concatenate([p["b12"], p["b22"]], axis=1)    # (1, 2H)

    bw = max(b1.shape[1], b2.shape[1], b3.shape[1])
    pad = lambda b: jnp.pad(b, ((0, 0), (0, bw - b.shape[1])))
    bpack = jnp.concatenate([pad(b1), pad(b2), pad(b3)], axis=0)   # (3, bw)

    return {"w1": w1, "w2": w2, "w3": w3, "bpack": bpack}


def net_linear_forward(x, fused, *, tb=2048, compute_dtype=jnp.bfloat16):
    """x: (B, n_feature) f32; fused: output of fuse_params().

    tb: batch tile (rows per grid step).  Weights are a few KB and stay
    VMEM-resident; the double-buffered x tile is only ~tb*512 B after lane
    padding, so tb up to several thousand rows fits the default scoped VMEM on
    every chip.  tb is additionally clamped so the grid keeps ~8 steps: v7x
    has 2 TensorCores and dimension_semantics=("parallel",) only helps with
    multiple tiles per core (also keeps the DMA/compute pipeline fed).
    compute_dtype: bf16 MXU inputs (default, ~3x fewer MXU cycles on
    v5e/v6e/v7x); accumulation, biases and ReLU are always f32.
    """
    B, F = x.shape
    L = fused["w3"].shape[1]

    # Cast the tiny weights once; biases stay f32 (added to f32 accumulators).
    w1 = fused["w1"].astype(compute_dtype)
    w2 = fused["w2"].astype(compute_dtype)
    w3 = fused["w3"].astype(compute_dtype)
    bpack = fused["bpack"].astype(jnp.float32)

    # Batch tile: multiple of 8 (sublane constraint), capped to keep >= ~8 steps.
    tb = max(8, (int(tb) // 8) * 8)
    steps_target = 8
    tb_cap = max(8, (B // steps_target // 8) * 8)
    tb = min(tb, tb_cap)
    grid = (pl.cdiv(B, tb),)          # ragged last block handled by Pallas masking

    n1, n2 = w1.shape[1], w2.shape[1]
    wbytes = sum(w.size * w.dtype.itemsize for w in (w1, w2, w3))
    cost = pl.CostEstimate(
        flops=2 * B * (F * n1 + n1 * n2 + n2 * L),
        transcendentals=0,
        bytes_accessed=x.size * x.dtype.itemsize + B * L * 4 + wbytes
        + bpack.size * 4,
    )

    const = lambda i: (0, 0)          # weights / biases: VMEM-resident across steps
    out = pl.pallas_call(
        _net_fused_kernel,
        out_shape=jax.ShapeDtypeStruct((B, L), jnp.float32),
        grid=grid,
        in_specs=[
            pl.BlockSpec((tb, F), lambda i: (i, 0)),   # x: tiled along batch
            pl.BlockSpec(w1.shape, const),
            pl.BlockSpec(w2.shape, const),
            pl.BlockSpec(w3.shape, const),
            pl.BlockSpec(bpack.shape, const),
        ],
        out_specs=pl.BlockSpec((tb, L), lambda i: (i, 0)),
        compiler_params=pltpu.CompilerParams(
            dimension_semantics=("parallel",),          # megacore-shard batch tiles
        ),
        cost_estimate=cost,
    )(x, w1, w2, w3, bpack)

    return out


# --------------------------------------------------------------------------- #
# Synthetic params + pure-JAX reference                                       #
# --------------------------------------------------------------------------- #
def init_params(key, n_feature, hidden_size, label_size):
    """Deterministic synthetic parameters. Weights stored as (in, out)."""
    def lin(k, fan_in, fan_out):
        kw, kb = jax.random.split(k)
        scale = 1.0 / jnp.sqrt(jnp.float32(fan_in))
        w = jax.random.uniform(kw, (fan_in, fan_out), jnp.float32, -scale, scale)
        b = jax.random.uniform(kb, (1, fan_out), jnp.float32, -scale, scale)
        return w, b

    ks = jax.random.split(key, 7)
    p = {}
    p["w11"], p["b11"] = lin(ks[0], n_feature - 4, hidden_size)
    p["w12"], p["b12"] = lin(ks[1], hidden_size, hidden_size)
    p["w13"], p["b13"] = lin(ks[2], hidden_size, label_size)
    p["w21"], p["b21"] = lin(ks[3], 4, hidden_size)
    p["w22"], p["b22"] = lin(ks[4], hidden_size, hidden_size)
    p["w23"], p["b23"] = lin(ks[5], hidden_size, label_size)
    p["wcat"], p["bcat"] = lin(ks[6], 2 * label_size, label_size)
    return p


def net_linear_reference(x, p):
    """Pure-JAX reference of the original (unfused) forward pass."""
    f = x.shape[1]
    s1, s2 = x[:, : f - 4], x[:, f - 4:]
    s1 = jnp.maximum(s1 @ p["w11"] + p["b11"], 0.0)
    s1 = jnp.maximum(s1 @ p["w12"] + p["b12"], 0.0)
    s1 = s1 @ p["w13"] + p["b13"]
    s2 = jnp.maximum(s2 @ p["w21"] + p["b21"], 0.0)
    s2 = jnp.maximum(s2 @ p["w22"] + p["b22"], 0.0)
    s2 = s2 @ p["w23"] + p["b23"]
    s = jnp.concatenate([s1, s2], axis=-1)
    return s @ p["wcat"] + p["bcat"]


if __name__ == "__main__":
    # Full-precision f32 reference matmuls (matches the kernel's f32 MXU path).
    jax.config.update("jax_default_matmul_precision", "highest")

    batch = 50           # deliberately not a multiple of the tile -> exercises masking
    n_feature = 16
    hidden_size = 32
    label_size = 8

    key = jax.random.PRNGKey(0)
    kx, kp = jax.random.split(key)
    x = jax.random.normal(kx, (batch, n_feature), jnp.float32)
    params = init_params(kp, n_feature, hidden_size, label_size)
    fused = fuse_params(params)
    ref = net_linear_reference(x, params)

    # f32 path: only reassociation-level differences from the Wcat pre-fusion.
    out_f32 = net_linear_forward(x, fused, compute_dtype=jnp.float32)
    out_f32 = jax.block_until_ready(out_f32)
    assert out_f32.shape == (batch, label_size)
    assert jnp.allclose(out_f32, ref, atol=1e-4, rtol=1e-4), "f32 mismatch vs reference"

    # Default bf16-MXU path (f32 accumulation): looser tolerance.
    out_bf16 = net_linear_forward(x, fused)
    out_bf16 = jax.block_until_ready(out_bf16)
    assert out_bf16.shape == (batch, label_size)
    assert jnp.allclose(out_bf16, ref, atol=5e-2, rtol=5e-2), "bf16 mismatch vs reference"

    print("KERNEL_OK")
</pallas_src>

<mosaic_0001>
module attributes {stable_mosaic.version = 11 : i64} {
  func.func @_net_fused_kernel(%arg0: i32, %arg1: memref<8x16xf32, #tpu.memory_space<vmem>>, %arg2: memref<16x64xf32, #tpu.memory_space<vmem>>, %arg3: memref<64x64xf32, #tpu.memory_space<vmem>>, %arg4: memref<64x8xf32, #tpu.memory_space<vmem>>, %arg5: memref<3x64xf32, #tpu.memory_space<vmem>>, %arg6: memref<8x8xf32, #tpu.memory_space<vmem>>) attributes {dimension_semantics = [#tpu.dimension_semantics<parallel>], iteration_bounds = array<i64: 7>, scalar_prefetch = 0 : i64, scratch_operands = 0 : i64, tpu.core_type = #tpu.core_type<tc>, window_params = [{transform_indices = @transform_0, window_bounds = array<i64: 8, 16>}, {pipeline_mode = #tpu.pipeline_mode<synchronous>, transform_indices = @transform_1, window_bounds = array<i64: 16, 64>}, {pipeline_mode = #tpu.pipeline_mode<synchronous>, transform_indices = @transform_2, window_bounds = array<i64: 64, 64>}, {pipeline_mode = #tpu.pipeline_mode<synchronous>, transform_indices = @transform_3, window_bounds = array<i64: 64, 8>}, {pipeline_mode = #tpu.pipeline_mode<synchronous>, transform_indices = @transform_4, window_bounds = array<i64: 3, 64>}, {transform_indices = @transform_5, window_bounds = array<i64: 8, 8>}]} {
    %c0 = arith.constant 0 : index
    %c0_0 = arith.constant 0 : index
    %0 = vector.load %arg5[%c0, %c0_0] : memref<3x64xf32, #tpu.memory_space<vmem>>, vector<1x64xf32>
    %c1 = arith.constant 1 : index
    %c0_1 = arith.constant 0 : index
    %1 = vector.load %arg5[%c1, %c0_1] : memref<3x64xf32, #tpu.memory_space<vmem>>, vector<1x64xf32>
    %c2 = arith.constant 2 : index
    %c0_2 = arith.constant 0 : index
    %2 = vector.load %arg5[%c2, %c0_2] : memref<3x64xf32, #tpu.memory_space<vmem>>, vector<1x8xf32>
    %c0_3 = arith.constant 0 : index
    %c0_4 = arith.constant 0 : index
    %3 = vector.load %arg1[%c0_3, %c0_4] : memref<8x16xf32, #tpu.memory_space<vmem>>, vector<8x16xf32>
    %c0_5 = arith.constant 0 : index
    %c0_6 = arith.constant 0 : index
    %4 = vector.load %arg2[%c0_5, %c0_6] : memref<16x64xf32, #tpu.memory_space<vmem>>, vector<16x64xf32>
    %cst = arith.constant dense<0.000000e+00> : vector<8x64xf32>
    %5 = tpu.matmul %3, %4, %cst {dimension_numbers = #tpu.dot_dimension_numbers<[1], [0], [0], [1], [0, 0, 1, 1], [], []>, precision = #tpu.contract_precision<fp32>} : vector<8x16xf32>, vector<16x64xf32>, vector<8x64xf32> -> vector<8x64xf32>
    %6 = vector.broadcast %0 : vector<1x64xf32> to vector<8x64xf32>
    %7 = arith.addf %5, %6 : vector<8x64xf32>
    %cst_7 = arith.constant 0.000000e+00 : f32
    %8 = vector.broadcast %cst_7 : f32 to vector<8x64xf32>
    %9 = arith.maximumf %7, %8 : vector<8x64xf32>
    %c0_8 = arith.constant 0 : index
    %c0_9 = arith.constant 0 : index
    %10 = vector.load %arg3[%c0_8, %c0_9] : memref<64x64xf32, #tpu.memory_space<vmem>>, vector<64x64xf32>
    %cst_10 = arith.constant dense<0.000000e+00> : vector<8x64xf32>
    %11 = tpu.matmul %9, %10, %cst_10 {dimension_numbers = #tpu.dot_dimension_numbers<[1], [0], [0], [1], [0, 0, 1, 1], [], []>, precision = #tpu.contract_precision<fp32>} : vector<8x64xf32>, vector<64x64xf32>, vector<8x64xf32> -> vector<8x64xf32>
    %12 = vector.broadcast %1 : vector<1x64xf32> to vector<8x64xf32>
    %13 = arith.addf %11, %12 : vector<8x64xf32>
    %cst_11 = arith.constant 0.000000e+00 : f32
    %14 = vector.broadcast %cst_11 : f32 to vector<8x64xf32>
    %15 = arith.maximumf %13, %14 : vector<8x64xf32>
    %c0_12 = arith.constant 0 : index
    %c0_13 = arith.constant 0 : index
    %16 = vector.load %arg4[%c0_12, %c0_13] : memref<64x8xf32, #tpu.memory_space<vmem>>, vector<64x8xf32>
    %cst_14 = arith.constant dense<0.000000e+00> : vector<8x8xf32>
    %17 = tpu.matmul %15, %16, %cst_14 {dimension_numbers = #tpu.dot_dimension_numbers<[1], [0], [0], [1], [0, 0, 1, 1], [], []>, precision = #tpu.contract_precision<fp32>} : vector<8x64xf32>, vector<64x8xf32>, vector<8x8xf32> -> vector<8x8xf32>
    %18 = vector.broadcast %2 : vector<1x8xf32> to vector<8x8xf32>
    %19 = arith.addf %17, %18 : vector<8x8xf32>
    %c0_15 = arith.constant 0 : index
    %c0_16 = arith.constant 0 : index
    %20 = vector.load %arg6[%c0_15, %c0_16] : memref<8x8xf32, #tpu.memory_space<vmem>>, vector<8x8xf32>
    tpu.vector_store %arg6[%c0_15, %c0_16], %19 {strides = array<i32>} : memref<8x8xf32, #tpu.memory_space<vmem>>, vector<8x8xf32>,
    return
  }
  func.func @transform_0(%arg0: i32) -> (i32, i32) {
    %c0_i32 = arith.constant 0 : i32
    %c0_i32_0 = arith.constant 0 : i32
    return %arg0, %c0_i32 : i32, i32
  }
  func.func @transform_1(%arg0: i32) -> (i32, i32) {
    %c0_i32 = arith.constant 0 : i32
    %c0_i32_0 = arith.constant 0 : i32
    %c0_i32_1 = arith.constant 0 : i32
    return %c0_i32, %c0_i32_0 : i32, i32
  }
  func.func @transform_2(%arg0: i32) -> (i32, i32) {
    %c0_i32 = arith.constant 0 : i32
    %c0_i32_0 = arith.constant 0 : i32
    %c0_i32_1 = arith.constant 0 : i32
    return %c0_i32, %c0_i32_0 : i32, i32
  }
  func.func @transform_3(%arg0: i32) -> (i32, i32) {
    %c0_i32 = arith.constant 0 : i32
    %c0_i32_0 = arith.constant 0 : i32
    %c0_i32_1 = arith.constant 0 : i32
    return %c0_i32, %c0_i32_0 : i32, i32
  }
  func.func @transform_4(%arg0: i32) -> (i32, i32) {
    %c0_i32 = arith.constant 0 : i32
    %c0_i32_0 = arith.constant 0 : i32
    %c0_i32_1 = arith.constant 0 : i32
    return %c0_i32, %c0_i32_0 : i32, i32
  }
  func.func @transform_5(%arg0: i32) -> (i32, i32) {
    %c0_i32 = arith.constant 0 : i32
    %c0_i32_0 = arith.constant 0 : i32
    return %arg0, %c0_i32 : i32, i32
  }
}

</mosaic_0001>

<bundles_post_ra>
// kernel: tpu_custom_call.1
= control target key start
LH: loop header
LB: loop body
LE: loop exit
PB: predicated region body
PF: predicated region fallthrough
CT: control target
= control target key end

     0   :  { %s2509_s18 = smov 0   ;;  %s2850_s0 = inlined_call_operand.vmem [shape: f32[50,16], index: 0, kind: input, shape index: {}]   ;;  %s2851_s1 = inlined_call_operand.vmem [shape: f32[16,64], index: 1, kind: input, shape index: {}]   ;;  %s2852_s2 = inlined_call_operand.vmem [shape: f32[64,64], index: 2, kind: input, shape index: {}]   ;;  %s2853_s3 = inlined_call_operand.vmem [shape: f32[64,8], index: 3, kind: input, shape index: {}]   ;;  %s2854_s4 = inlined_call_operand.vmem [shape: f32[3,64], index: 4, kind: input, shape index: {}]   ;;  %s2855_s5 = inlined_call_operand.vmem [shape: f32[50,8], index: 5, kind: output, shape index: {}]  }
   0x1 LB: > { %s1855_s19 = sadd.s32 4294967295, %s2474_s18   ;;  %p1859_p0 = scmp.ge.s32.totalorder %s2474_s18, 1  ;;  %s2474_s18 = sphi %s2509_s18, %s15_s18  }
   0x2   : > { %p186_p1 = scmp.lt.s32.totalorder %s2474_s18, 8 }
   0x4   : > { %p187_p2 = pnand %p1859_p0, %p186_p1 }
   0x5   : > { %v224_v0 = vld [vmem:[%s2851_s1] sm:$0xff] (!%p187_p2)  ;;  %v225_v1 = vld [vmem:[%s2851_s1 + $0x8] sm:$0xff] (!%p187_p2)  ;;  %p212_p3 = scmp.lt.s32.totalorder (!%p187_p2), %s1855_s19, 6  ;;  %v2476_v2 = vmov (!%p187_p2), 0.0|0.0   ;;  %vm2477_vm0 = vmmov (!%p187_p2), 0   ;;  %v2478_v5 = vmov (!%p187_p2), 0.0  }
   0x6   : > { %190 = sbr.rel (%p187_p2) target bundleno = 873 (0x369), region = 40  ;;  %2263 = vmatprep.subr.bf16.mxu0 (!%p187_p2), %v2476_v2  ;;  %v235_v3 = vand.u32 (!%p187_p2), 4294901760, %v224_v0  ;;  %v238_v4 = vand.u32 (!%p187_p2), 4294901760, %v225_v1  ;;  %1997 = vmatprep.mubr.msk.f32.mxu0 (!%p187_p2), %vm2477_vm0, %v2478_v5  ;;  %vm230_vm1 = vcmask (!%p187_p2), 130048   ;;  %v694_v25 = vld [vmem:[%s2852_s2] sm:$0xff] (!%p187_p2)  ;;  %v695_v26 = vld [vmem:[%s2852_s2 + $0x8] sm:$0xff] (!%p187_p2) }
   0x7   : > { %2281 = vmatprep.subr.bf16.mxu1 (!%p187_p2), %v2476_v2  ;;  %2051 = vmatprep.mubr.msk.f32.mxu1 (!%p187_p2), %vm2477_vm0, %v2478_v5  ;;  %v711_v27 = vand.u32 (!%p187_p2), 4294901760, %v694_v25  ;;  %v714_v28 = vand.u32 (!%p187_p2), 4294901760, %v695_v26  ;;  %v696_v30 = vld [vmem:[%s2852_s2 + $0x10] sm:$0xff] (!%p187_p2)  ;;  %v697_v31 = vld [vmem:[%s2852_s2 + $0x18] sm:$0xff] (!%p187_p2)  ;;  %v698_v35 = vld [vmem:[%s2852_s2 + $0x20] sm:$0xff] (!%p187_p2)  ;;  %vm706_vm2 = vcmask (!%p187_p2), 523264  }
   0x8   : > { %v2264_v6 = vpack.c.bf16 (!%p187_p2), %v238_v4, %v235_v3  ;;  %v313_v7 = vsub.f32 (!%p187_p2), %v224_v0, %v235_v3  ;;  %v320_v8 = vsub.f32 (!%p187_p2), %v225_v1, %v238_v4  ;;  %v717_v32 = vand.u32 (!%p187_p2), 4294901760, %v696_v30  ;;  %v699_v36 = vld [vmem:[%s2852_s2 + $0x28] sm:$0xff] (!%p187_p2)  ;;  %v700_v42 = vld [vmem:[%s2852_s2 + $0x30] sm:$0xff] (!%p187_p2)  ;;  %v701_v43 = vld [vmem:[%s2852_s2 + $0x38] sm:$0xff] (!%p187_p2) }
   0x9   : > { %v2561_v29 = vpack.c.bf16 (!%p187_p2), %v714_v28, %v711_v27  ;;  %v720_v33 = vand.u32 (!%p187_p2), 4294901760, %v697_v31  ;;  %v723_v37 = vand.u32 (!%p187_p2), 4294901760, %v698_v35  ;;  %v726_v38 = vand.u32 (!%p187_p2), 4294901760, %v699_v36 }
   0xa   : > { %2265 = vmatpush3.bf16.msra.mxu0 (!%p187_p2), %v2264_v6  ;;  %v314_v9 = vand.u32 (!%p187_p2), 4294901760, %v313_v7  ;;  %v321_v10 = vand.u32 (!%p187_p2), 4294901760, %v320_v8  ;;  %v2270_v23 = vpack.c.bf16 (!%p187_p2), %v320_v8, %v313_v7  ;;  %v2581_v39 = vsub.f32 (!%p187_p2), %v694_v25, %v711_v27  ;;  %v2650_v27 = vld [vmem:[%s2853_s3] sm:$0xff] (!%p187_p2) }
   0xb   : > { %2266 = vmatprep.subr.bf16.mxu0 (!%p187_p2), %v2476_v2  ;;  %2283 = vmatpush3.bf16.msra.mxu1 (!%p187_p2), %v2561_v29  ;;  %v2571_v34 = vpack.c.bf16 (!%p187_p2), %v720_v33, %v717_v32  ;;  %v2583_v40 = vsub.f32 (!%p187_p2), %v695_v26, %v714_v28  ;;  %v2585_v41 = vpack.c.bf16 (!%p187_p2), %v726_v38, %v723_v37  ;;  %v729_v48 = vand.u32 (!%p187_p2), 4294901760, %v700_v42  ;;  %v2655_v28 = vld [vmem:[%s2853_s3 + $0x8] sm:$0xff] (!%p187_p2) }
   0xc   : > { %v315_v13 = vsub.f32 (!%p187_p2), %v313_v7, %v314_v9  ;;  %v322_v14 = vsub.f32 (!%p187_p2), %v320_v8, %v321_v10  ;;  %v2276_v24 = vpack.c.bf16 (!%p187_p2), %v321_v10, %v314_v9  ;;  %2284 = vmatprep.subr.bf16.mxu1 (!%p187_p2), %v2476_v2  ;;  %v2593_v44 = vsub.f32 (!%p187_p2), %v696_v30, %v717_v32  ;;  %v2660_v30 = vld [vmem:[%s2853_s3 + $0x10] sm:$0xff] (!%p187_p2) }
   0xd   : > { %s2857_s19 = smov (!%p212_p3, %s1855_s19), 6  ;;  %v2595_v45 = vsub.f32 %v697_v31, %v720_v33  ;;  %v2598_v46 = vsub.f32 %v698_v35, %v723_v37  ;;  %v2600_v47 = vsub.f32 %v699_v36, %v726_v38  ;;  %v732_v49 = vand.u32 4294901760, %v701_v43  ;;  %v2667_v33 = vld [vmem:[%s2853_s3 + $0x18] sm:$0xff] }
   0xe   : > { %s1860_s24 = sshll.u32 %s2857_s19, 3  ;;  %v316_v17 = vand.u32 4294901760, %v315_v13  ;;  %v323_v18 = vand.u32 4294901760, %v322_v14  ;;  %v796_v50 = vand.u32 4294901760, %v2581_v39  ;;  %v803_v51 = vand.u32 4294901760, %v2583_v40 }
   0xf   : > { %s215_s27 = scalar_lea.vmem %s2850_s0, %s1860_s24  ;;  %2286 = vmatpush3.bf16.msra.mxu1 %v2571_v34  ;;  %v2605_v52 = vpack.c.bf16 %v732_v49, %v729_v48  ;;  %v2607_v53 = vsub.f32 %v700_v42, %v729_v48  ;;  %v2609_v54 = vsub.f32 %v701_v43, %v732_v49  ;;  %v810_v58 = vand.u32 4294901760, %v2593_v44  ;;  %s219_s23 = scalar_lea.vmem %s2855_s5, %s1860_s24 }
  0x10   : > { %v223_v11 = vld [vmem:[%s215_s27] sm:$0xff]  ;;  %v2267_v21 = vpack.c.bf16 %v323_v18, %v316_v17  ;;  %2287 = vmatprep.subr.bf16.mxu1 %v2476_v2  ;;  %v797_v55 = vsub.f32 %v2581_v39, %v796_v50  ;;  %v804_v56 = vsub.f32 %v2583_v40, %v803_v51  ;;  %v817_v59 = vand.u32 4294901760, %v2595_v45 }
  0x11   : > { %v232_v12 = vsel %vm230_vm1, %v223_v11, 0  ;;  %v811_v61 = vsub.f32 %v2593_v44, %v810_v58  ;;  %v824_v3 = vand.u32 4294901760, %v2598_v46  ;;  %v831_v4 = vand.u32 4294901760, %v2600_v47 }
  0x12   : > { %v301_v15 = vand.u32 4294901760, %v232_v12  ;;  %v798_v57 = vand.u32 4294901760, %v797_v55  ;;  %v805_v60 = vand.u32 4294901760, %v804_v56  ;;  %v818_v62 = vsub.f32 %v2595_v45, %v817_v59 }
  0x13   : > { %2289 = vmatpush3.bf16.msra.mxu1 %v2585_v41  ;;  %v812_v0 = vand.u32 4294901760, %v811_v61  ;;  %v825_v7 = vsub.f32 %v2598_v46, %v824_v3  ;;  %v832_v8 = vsub.f32 %v2600_v47, %v831_v4  ;;  %v838_v11 = vand.u32 4294901760, %v2607_v53  ;;  %v1862_v61 = vld [vmem:[%s2854_s4] ss:$0 sm:$0xff] }
  0x14   : > { %v302_v16 = vsub.f32 %v232_v12, %v301_v15  ;;  %2290 = vmatprep.subr.bf16.mxu1 %v2476_v2  ;;  %v2619_v63 = vpack.c.bf16 %v805_v60, %v798_v57  ;;  %v819_v1 = vand.u32 4294901760, %v818_v62  ;;  %v845_v12 = vand.u32 4294901760, %v2609_v54 }
  0x15   : > { %v826_v9 = vand.u32 4294901760, %v825_v7  ;;  %v833_v10 = vand.u32 4294901760, %v832_v8  ;;  %v839_v14 = vsub.f32 %v2607_v53, %v838_v11  ;;  %v2643_v25 = vpack.c.bf16 %v831_v4, %v824_v3 }
  0x16   : > { %v303_v19 = vand.u32 4294901760, %v302_v16  ;;  %v2645_v26 = vpack.c.bf16 %v845_v12, %v838_v11  ;;  %v1264_v31 = vand.u32 4294901760, %v2650_v27  ;;  %v1267_v32 = vand.u32 4294901760, %v2655_v28 }
  0x17   : > { %2292 = vmatpush3.bf16.msra.mxu1 %v2605_v52  ;;  %v2300_v13 = vpack.c.bf16 %v833_v10, %v826_v9  ;;  %v1270_v35 = vand.u32 4294901760, %v2660_v30  ;;  %v1273_v36 = vand.u32 4294901760, %v2667_v33  ;;  %vm1800_vm3 = vcmask 64512  }
  0x18   : > { %v304_v20 = vsub.f32 %v302_v16, %v303_v19  ;;  %2293 = vmatprep.subr.bf16.mxu1 %v2476_v2  ;;  %v2674_v37 = vsub.f32 %v2650_v27, %v1264_v31  ;;  %v2679_v38 = vsub.f32 %v2655_v28, %v1267_v32 }
  0x1a   : > { %v305_v22 = vand.u32 4294901760, %v304_v20  ;;  %v2309_v20 = vpack.c.bf16 %v2595_v45, %v2593_v44  ;;  %v1349_v42 = vand.u32 4294901760, %v2674_v37  ;;  %v1356_v43 = vand.u32 4294901760, %v2679_v38 }
  0x1c   : > { %1998 = vmatmul.mubr.f32.vlgmr.msra.gmra.mrb[0].mxu0 %v305_v22  ;;  %v2315_v22 = vpack.c.bf16 %v2609_v54, %v2607_v53  ;;  %v1350_v48 = vsub.f32 %v2674_v37, %v1349_v42  ;;  %v1357_v49 = vsub.f32 %v2679_v38, %v1356_v43 }
  0x1d   : > { %2268 = vmatpush3.bf16.msra.mxu0 %v2267_v21  ;;  %2004 = vmatprep.mubr.msk.f32.mxu0 %vm2477_vm0, %v2478_v5  ;;  %v2312_v21 = vpack.c.bf16 %v2600_v47, %v2598_v46 }
  0x1e   : > { %2269 = vmatprep.subr.bf16.mxu0 %v2476_v2  ;;  %v1351_v55 = vand.u32 4294901760, %v1350_v48  ;;  %v1358_v56 = vand.u32 4294901760, %v1357_v49 }
  0x24   : > { %2005 = vmatmul.mubr.f32.vlgmr.msra.gmra.mrb[0].mxu0 %v301_v15 }
  0x25   : > { %2271 = vmatpush3.bf16.msra.mxu0 %v2270_v23  ;;  %2011 = vmatprep.mubr.msk.f32.mxu0 %vm2477_vm0, %v2478_v5  ;;  %v2639_v23 = vpack.c.bf16 %v803_v51, %v796_v50 }
  0x26   : > { %2272 = vmatprep.subr.bf16.mxu0 %v2476_v2 }
  0x2c   : > { %2012 = vmatmul.mubr.f32.vlgmr.msra.gmra.mrb[0].mxu0 %v302_v16  ;;  %v840_v16 = vand.u32 4294901760, %v839_v14 }
  0x2d   : > { %2274 = vmatpush3.bf16.msra.mxu0 %v2264_v6  ;;  %2018 = vmatprep.mubr.msk.f32.mxu0 %vm2477_vm0, %v2478_v5 }
  0x2e   : > { %2275 = vmatprep.subr.bf16.mxu0 %v2476_v2 }
  0x34   : > { %2019 = vmatmul.mubr.f32.vlgmr.msra.gmra.mrb[0].mxu0 %v303_v19  ;;  %v2306_v19 = vpack.c.bf16 %v2583_v40, %v2581_v39  ;;  %v2684_v39 = vsub.f32 %v2660_v30, %v1270_v35  ;;  %v2689_v40 = vsub.f32 %v2667_v33, %v1273_v36  ;;  %v1863_v33 = vld [vmem:[%s2854_s4 + $0x1] ss:$0 sm:$0xff] }
  0x35   : > { %2277 = vmatpush3.bf16.msra.mxu0 %v2276_v24  ;;  %2025 = vmatprep.mubr.msk.f32.mxu0 %vm2477_vm0, %v2478_v5  ;;  %v2641_v24 = vpack.c.bf16 %v817_v59, %v810_v58  ;;  %v2366_v59 = vpack.c.bf16 %v1358_v56, %v1351_v55 }
  0x36   : > { %2278 = vmatprep.subr.bf16.mxu0 %v2476_v2  ;;  %v1363_v44 = vand.u32 4294901760, %v2684_v39  ;;  %v1370_v45 = vand.u32 4294901760, %v2689_v40 }
  0x38   : > { %v1364_v50 = vsub.f32 %v2684_v39, %v1363_v44  ;;  %v1371_v51 = vsub.f32 %v2689_v40, %v1370_v45 }
  0x3a   : > { %v1365_v57 = vand.u32 4294901760, %v1364_v50  ;;  %v1372_v58 = vand.u32 4294901760, %v1371_v51  ;;  %v2790_v50 = vpack.c.bf16 %v1273_v36, %v1270_v35 }
  0x3c   : > { %2026 = vmatmul.mubr.f32.vlgmr.msra.gmra.mrb[0].mxu0 %v301_v15  ;;  %v2369_v60 = vpack.c.bf16 %v1372_v58, %v1365_v57  ;;  %v2378_v58 = vpack.c.bf16 %v2679_v38, %v2674_v37 }
  0x3d   : > { %2280 = vmatpush3.bf16.msra.mxu0 %v2264_v6  ;;  %2032 = vmatprep.mubr.msk.f32.mxu0 %vm2477_vm0, %v2478_v5  ;;  %v2623_v6 = vpack.c.bf16 %v819_v1, %v812_v0 }
  0x3e   : > { %2365 = vmatprep.subr.bf16.mxu0 %v2476_v2 }
  0x44   : > { %2033 = vmatmul.mubr.f32.vlgmr.msra.gmra.mrb[0].mxu0 %v301_v15  ;;  %v846_v15 = vsub.f32 %v2609_v54, %v845_v12  ;;  %v1255_v54 = vld [vmem:[%s2853_s3 + $0x38] sm:$0xff] }
  0x45   : > { %2184 = vmatprep.mubr.msk.f32.mxu0 %vm2477_vm0, %v2478_v5  ;;  %2367 = vmatpush3.bf16.msra.mxu0 %v2366_v59 }
  0x46   : > { %v847_v17 = vand.u32 4294901760, %v846_v15  ;;  %2368 = vmatprep.subr.bf16.mxu0 %v2476_v2 }
  0x48   : > { %v2303_v18 = vpack.c.bf16 %v847_v17, %v840_v16 }
  0x49   : > { %2370 = vmatpush3.bf16.msra.mxu0 %v2369_v60 }
  0x4a   : > { %2371 = vmatprep.subr.bf16.mxu0 %v2476_v2 }
 0x117   : > { %v689_v62 = vpop.f32.mrb[0].mxu0 }
 0x118   : > { %v2425_v0 = vadd.f32 %v1862_v61, %v689_v62  ;;  %v2034_v1 = vpop.f32.mrb[1].mxu0  ;;  %v2381_v61 = vpack.c.bf16 %v2689_v40, %v2684_v39  ;;  %v1864_v39 = vld [vmem:[%s2854_s4 + $0x2] ss:$0 sm:$0xff] }
 0x11a   : > { %v693_v3 = vmax.f32 %v2425_v0, 0.0 }
 0x11c   : > { %v708_v4 = vsel %vm706_vm2, %v693_v3, 0  ;;  %v2402_v3 = vpack.c.bf16 %v1356_v43, %v1349_v42 }
 0x11d   : > { %v783_v7 = vand.u32 4294901760, %v708_v4 }
 0x11f   : > { %v784_v8 = vsub.f32 %v708_v4, %v783_v7  ;;  %v2405_v4 = vpack.c.bf16 %v1370_v45, %v1363_v44 }
 0x121   : > { %v785_v9 = vand.u32 4294901760, %v784_v8 }
 0x123   : > { %v786_v10 = vsub.f32 %v784_v8, %v785_v9 }
 0x125   : > { %v787_v11 = vand.u32 4294901760, %v786_v10 }
 0x127   : > { %2052 = vmatmul.mubr.f32.vlgmr.msra.gmra.mrb[0].mxu1 %v787_v11 }
 0x128   : > { %2295 = vmatpush3.bf16.msra.mxu1 %v2619_v63  ;;  %2070 = vmatprep.mubr.msk.f32.mxu1 %vm2477_vm0, %v2478_v5 }
 0x129   : > { %2296 = vmatprep.subr.bf16.mxu1 %v2476_v2 }
 0x12c   : > { %2298 = vmatpush3.bf16.msra.mxu1 %v2623_v6 }
 0x12d   : > { %2299 = vmatprep.subr.bf16.mxu1 %v2476_v2 }
 0x130   : > { %2301 = vmatpush3.bf16.msra.mxu1 %v2300_v13  ;;  %v1285_v13 = vand.u32 4294901760, %v1255_v54 }
 0x131   : > { %2302 = vmatprep.subr.bf16.mxu1 %v2476_v2 }
 0x132   : > { %v1397_v17 = vsub.f32 %v1255_v54, %v1285_v13 }
 0x134   : > { %2304 = vmatpush3.bf16.msra.mxu1 %v2303_v18 }
 0x135   : > { %2305 = vmatprep.subr.bf16.mxu1 %v2476_v2 }
 0x137   : > { %2071 = vmatmul.mubr.f32.vlgmr.msra.gmra.mrb[0].mxu1 %v783_v7 }
 0x138   : > { %2307 = vmatpush3.bf16.msra.mxu1 %v2306_v19  ;;  %2089 = vmatprep.mubr.msk.f32.mxu1 %vm2477_vm0, %v2478_v5 }
 0x139   : > { %2308 = vmatprep.subr.bf16.mxu1 %v2476_v2 }
 0x13c   : > { %2310 = vmatpush3.bf16.msra.mxu1 %v2309_v20 }
 0x13d   : > { %2311 = vmatprep.subr.bf16.mxu1 %v2476_v2 }
 0x140   : > { %2313 = vmatpush3.bf16.msra.mxu1 %v2312_v21  ;;  %v1398_v21 = vand.u32 4294901760, %v1397_v17 }
 0x141   : > { %2314 = vmatprep.subr.bf16.mxu1 %v2476_v2 }
 0x144   : > { %2316 = vmatpush3.bf16.msra.mxu1 %v2315_v22 }
 0x145   : > { %2317 = vmatprep.subr.bf16.mxu1 %v2476_v2 }
 0x147   : > { %2090 = vmatmul.mubr.f32.vlgmr.msra.gmra.mrb[0].mxu1 %v784_v8 }
 0x148   : > { %2319 = vmatpush3.bf16.msra.mxu1 %v2561_v29  ;;  %2108 = vmatprep.mubr.msk.f32.mxu1 %vm2477_vm0, %v2478_v5 }
 0x149   : > { %2320 = vmatprep.subr.bf16.mxu1 %v2476_v2 }
 0x14c   : > { %2322 = vmatpush3.bf16.msra.mxu1 %v2571_v34 }
 0x14d   : > { %2323 = vmatprep.subr.bf16.mxu1 %v2476_v2 }
 0x150   : > { %2325 = vmatpush3.bf16.msra.mxu1 %v2585_v41 }
 0x151   : > { %2326 = vmatprep.subr.bf16.mxu1 %v2476_v2 }
 0x154   : > { %2328 = vmatpush3.bf16.msra.mxu1 %v2605_v52 }
 0x155   : > { %2329 = vmatprep.subr.bf16.mxu1 %v2476_v2 }
 0x157   : > { %2109 = vmatmul.mubr.f32.vlgmr.msra.gmra.mrb[0].mxu1 %v785_v9 }
 0x158   : > { %2331 = vmatpush3.bf16.msra.mxu1 %v2639_v23  ;;  %2127 = vmatprep.mubr.msk.f32.mxu1 %vm2477_vm0, %v2478_v5 }
 0x159   : > { %2332 = vmatprep.subr.bf16.mxu1 %v2476_v2 }
 0x15c   : > { %2334 = vmatpush3.bf16.msra.mxu1 %v2641_v24  ;;  %v1399_v24 = vsub.f32 %v1397_v17, %v1398_v21 }
 0x15d   : > { %2335 = vmatprep.subr.bf16.mxu1 %v2476_v2 }
 0x15e   : > { %v1400_v48 = vand.u32 4294901760, %v1399_v24 }
 0x160   : > { %2337 = vmatpush3.bf16.msra.mxu1 %v2643_v25  ;;  %v2781_v25 = vpack.c.bf16 %v1267_v32, %v1264_v31 }
 0x161   : > { %2338 = vmatprep.subr.bf16.mxu1 %v2476_v2 }
 0x164   : > { %2340 = vmatpush3.bf16.msra.mxu1 %v2645_v26 }
 0x165   : > { %2341 = vmatprep.subr.bf16.mxu1 %v2476_v2 }
 0x167   : > { %2128 = vmatmul.mubr.f32.vlgmr.msra.gmra.mrb[0].mxu1 %v783_v7 }
 0x168   : > { %2343 = vmatpush3.bf16.msra.mxu1 %v2561_v29  ;;  %2146 = vmatprep.mubr.msk.f32.mxu1 %vm2477_vm0, %v2478_v5  ;;  %v1252_v29 = vld [vmem:[%s2853_s3 + $0x20] sm:$0xff] }
 0x169   : > { %2344 = vmatprep.subr.bf16.mxu1 %v2476_v2  ;;  %v1276_v46 = vand.u32 4294901760, %v1252_v29 }
 0x16b   : > { %v1376_v47 = vsub.f32 %v1252_v29, %v1276_v46 }
 0x16c   : > { %2346 = vmatpush3.bf16.msra.mxu1 %v2571_v34  ;;  %v1253_v34 = vld [vmem:[%s2853_s3 + $0x28] sm:$0xff] }
 0x16d   : > { %2347 = vmatprep.subr.bf16.mxu1 %v2476_v2  ;;  %v1377_v63 = vand.u32 4294901760, %v1376_v47 }
 0x16f   : > { %v1378_v14 = vsub.f32 %v1376_v47, %v1377_v63 }
 0x170   : > { %2349 = vmatpush3.bf16.msra.mxu1 %v2585_v41  ;;  %v1279_v41 = vand.u32 4294901760, %v1253_v34 }
 0x171   : > { %2350 = vmatprep.subr.bf16.mxu1 %v2476_v2  ;;  %v1379_v18 = vand.u32 4294901760, %v1378_v14 }
 0x172   : > { %v1383_v53 = vsub.f32 %v1253_v34, %v1279_v41  ;;  %v2360_v27 = vpack.c.bf16 %v1279_v41, %v1276_v46 }
 0x174   : > { %2352 = vmatpush3.bf16.msra.mxu1 %v2605_v52  ;;  %v1254_v52 = vld [vmem:[%s2853_s3 + $0x30] sm:$0xff]  ;;  %v1384_v6 = vand.u32 4294901760, %v1383_v53  ;;  %v2384_v31 = vpack.c.bf16 %v1383_v53, %v1376_v47 }
 0x175   : > { %2353 = vmatprep.subr.bf16.mxu1 %v2476_v2  ;;  %v1282_v12 = vand.u32 4294901760, %v1254_v52 }
 0x176   : > { %v1385_v15 = vsub.f32 %v1383_v53, %v1384_v6  ;;  %v2408_v30 = vpack.c.bf16 %v1384_v6, %v1377_v63 }
 0x177   : > { %2147 = vmatmul.mubr.f32.vlgmr.msra.gmra.mrb[0].mxu1 %v783_v7  ;;  %v1390_v16 = vsub.f32 %v1254_v52, %v1282_v12  ;;  %v2363_v28 = vpack.c.bf16 %v1285_v13, %v1282_v12 }
 0x178   : > { %2165 = vmatprep.mubr.msk.f32.mxu1 %vm2477_vm0, %v2478_v5  ;;  %v1386_v19 = vand.u32 4294901760, %v1385_v15  ;;  %2355 = vmatpush3.bf16.msra.mxu1 %v2781_v25 }
 0x179   : > { %v1391_v20 = vand.u32 4294901760, %v1390_v16  ;;  %2356 = vmatprep.subr.bf16.mxu1 %v2476_v2  ;;  %v2387_v32 = vpack.c.bf16 %v1397_v17, %v1390_v16 }
 0x17a   : > { %v2372_v22 = vpack.c.bf16 %v1386_v19, %v1379_v18 }
 0x17b   : > { %v1392_v23 = vsub.f32 %v1390_v16, %v1391_v20  ;;  %v2411_v51 = vpack.c.bf16 %v1398_v21, %v1391_v20 }
 0x17c   : > { %2373 = vmatpush3.bf16.msra.mxu0 %v2372_v22  ;;  %2358 = vmatpush3.bf16.msra.mxu1 %v2790_v50 }
 0x17d   : > { %v1393_v26 = vand.u32 4294901760, %v1392_v23  ;;  %2374 = vmatprep.subr.bf16.mxu0 %v2476_v2  ;;  %2359 = vmatprep.subr.bf16.mxu1 %v2476_v2 }
 0x17f   : > { %v2375_v49 = vpack.c.bf16 %v1400_v48, %v1393_v26 }
 0x180   : > { %2361 = vmatpush3.bf16.msra.mxu1 %v2360_v27 }
 0x181   : > { %2376 = vmatpush3.bf16.msra.mxu0 %v2375_v49  ;;  %2362 = vmatprep.subr.bf16.mxu1 %v2476_v2 }
 0x182   : > { %2377 = vmatprep.subr.bf16.mxu0 %v2476_v2 }
 0x184   : > { %2364 = vmatpush3.bf16.msra.mxu1 %v2363_v28 }
 0x24a   : > { %v1243_v35 = vpop.f32.mrb[0].mxu1 }
 0x24b   : > { %v2426_v36 = vadd.f32 %v1863_v33, %v1243_v35  ;;  %v2148_v55 = vpop.f32.mrb[1].mxu1 }
 0x24d   : > { %v1247_v56 = vmax.f32 %v2426_v36, 0.0 }
 0x24f   : > { %v1261_v57 = vsel %vm706_vm2, %v1247_v56, 0 }
 0x250   : > { %v1336_v59 = vand.u32 4294901760, %v1261_v57 }
 0x252   : > { %v1337_v60 = vsub.f32 %v1261_v57, %v1336_v59  ;;  %2185 = vmatmul.mubr.f32.vlgmr.msra.gmra.mrb[2].mxu0 %v1336_v59 }
 0x253   : > { %2379 = vmatpush3.bf16.msra.mxu0 %v2378_v58  ;;  %2203 = vmatprep.mubr.msk.f32.mxu0 %vm2477_vm0, %v2478_v5 }
 0x254   : > { %v1338_v62 = vand.u32 4294901760, %v1337_v60  ;;  %2380 = vmatprep.subr.bf16.mxu0 %v2476_v2 }
 0x256   : > { %v1339_v0 = vsub.f32 %v1337_v60, %v1338_v62 }
 0x257   : > { %2382 = vmatpush3.bf16.msra.mxu0 %v2381_v61 }
 0x258   : > { %2383 = vmatprep.subr.bf16.mxu0 %v2476_v2  ;;  %v1340_v1 = vand.u32 4294901760, %v1339_v0 }
 0x25a   : > { %2166 = vmatmul.mubr.f32.vlgmr.msra.gmra.mrb[2].mxu1 %v1340_v1 }
 0x25b   : > { %2385 = vmatpush3.bf16.msra.mxu0 %v2384_v31 }
 0x25c   : > { %2386 = vmatprep.subr.bf16.mxu0 %v2476_v2 }
 0x25f   : > { %2388 = vmatpush3.bf16.msra.mxu0 %v2387_v32 }
 0x260   : > { %2389 = vmatprep.subr.bf16.mxu0 %v2476_v2 }
 0x262   : > { %2204 = vmatmul.mubr.f32.vlgmr.msra.gmra.mrb[2].mxu0 %v1337_v60 }
 0x263   : > { %2391 = vmatpush3.bf16.msra.mxu0 %v2781_v25  ;;  %2222 = vmatprep.mubr.msk.f32.mxu0 %vm2477_vm0, %v2478_v5 }
 0x264   : > { %2392 = vmatprep.subr.bf16.mxu0 %v2476_v2 }
 0x267   : > { %2394 = vmatpush3.bf16.msra.mxu0 %v2790_v50 }
 0x268   : > { %2395 = vmatprep.subr.bf16.mxu0 %v2476_v2 }
 0x26b   : > { %2397 = vmatpush3.bf16.msra.mxu0 %v2360_v27 }
 0x26c   : > { %2398 = vmatprep.subr.bf16.mxu0 %v2476_v2 }
 0x26f   : > { %2400 = vmatpush3.bf16.msra.mxu0 %v2363_v28 }
 0x270   : > { %2401 = vmatprep.subr.bf16.mxu0 %v2476_v2 }
 0x272   : > { %2223 = vmatmul.mubr.f32.vlgmr.msra.gmra.mrb[2].mxu0 %v1338_v62 }
 0x273   : > { %2403 = vmatpush3.bf16.msra.mxu0 %v2402_v3  ;;  %2241 = vmatprep.mubr.msk.f32.mxu0 %vm2477_vm0, %v2478_v5 }
 0x274   : > { %2404 = vmatprep.subr.bf16.mxu0 %v2476_v2 }
 0x277   : > { %2406 = vmatpush3.bf16.msra.mxu0 %v2405_v4 }
 0x278   : > { %2407 = vmatprep.subr.bf16.mxu0 %v2476_v2 }
 0x27b   : > { %2409 = vmatpush3.bf16.msra.mxu0 %v2408_v30 }
 0x27c   : > { %2410 = vmatprep.subr.bf16.mxu0 %v2476_v2 }
 0x27f   : > { %2412 = vmatpush3.bf16.msra.mxu0 %v2411_v51 }
 0x280   : > { %2413 = vmatprep.subr.bf16.mxu0 %v2476_v2 }
 0x282   : > { %2242 = vmatmul.mubr.f32.vlgmr.msra.gmra.mrb[2].mxu0 %v1336_v59 }
 0x283   : > { %2415 = vmatpush3.bf16.msra.mxu0 %v2781_v25  ;;  %2260 = vmatprep.mubr.msk.f32.mxu0 %vm2477_vm0, %v2478_v5 }
 0x284   : > { %2416 = vmatprep.subr.bf16.mxu0 %v2476_v2 }
 0x287   : > { %2418 = vmatpush3.bf16.msra.mxu0 %v2790_v50 }
 0x288   : > { %2419 = vmatprep.subr.bf16.mxu0 %v2476_v2 }
 0x28b   : > { %2421 = vmatpush3.bf16.msra.mxu0 %v2360_v27 }
 0x28c   : > { %2422 = vmatprep.subr.bf16.mxu0 %v2476_v2 }
 0x28f   : > { %2424 = vmatpush3.bf16.msra.mxu0 %v2363_v28 }
 0x292   : > { %2261 = vmatmul.mubr.f32.vlgmr.msra.gmra.mrb[2].mxu0 %v1336_v59 }
 0x32d   : > { %v1342_v37 = vpop.f32.mrb[2].mxu1 }
 0x32e   : > { %v2167_v38 = vpop.f32.mrb[3].mxu1  ;;  %v1343_v40 = vadd.f32 %v1864_v39, %v1342_v37 }
 0x365   : > { %v1796_v5 = vpop.f32.mrb[2].mxu0 }
 0x366   : > { %v2428_v42 = vadd.f32 %v1796_v5, %v1343_v40  ;;  %v2262_v43 = vpop.f32.mrb[3].mxu0 }
 0x368   : > { %1801 = vst.msk [vmem:[%s219_s23] sm:$0xff] %vm1800_vm3, %v2428_v42 }
 0x369 PF: > { %s15_s18 = sadd.s32 1, %s2474_s18  }
 0x36a   : > { %p12_p4 = scmp.ge.s32.totalorder %s15_s18, 9  }
 0x36c   :  { %14 = sbr.rel (!%p12_p4) target bundleno = 1 (0x1), region = 70 }

</bundles_post_ra>
